<compile_context>
chip_gen: v6e
topology: v6e:2x2x1
jax: 0.10.0
libtpu: 0.0.40
codegen_flags: <defaults>
</compile_context>

<pallas_src>
import functools
from typing import Dict, Optional, Tuple

import jax
import jax.numpy as jnp
from jax.experimental import pallas as pl
from jax.experimental.pallas import tpu as pltpu  # noqa: F401  (TPU backend)


LEAKY_SLOPE = 0.01  # torch.nn.LeakyReLU default negative_slope


def _round_up(x: int, m: int) -> int:
    return ((x + m - 1) // m) * m


def _make_cpa_vae_kernel(n_layers: int, n_phenos: int, out_pad: int):
    """Build the fused decode+sample kernel (static layer count / widths)."""

    def kernel(*refs):
        # ---- inputs ------------------------------------------------------
        dblk_ref, zb_ref, e_ref, eps_ref = refs[:4]        # folded-M tensors
        layer_refs = refs[4:4 + 2 * n_layers]              # (W1, b1, W2, b2, ...)
        wh_ref, bh_ref = refs[4 + 2 * n_layers:4 + 2 * n_layers + 2]
        out_ref = refs[-1]                                  # fused output

        # z = z_basal + D @ E  (all particles at once via block-diagonal D)
        z = zb_ref[...] + jnp.dot(
            dblk_ref[...], e_ref[...], preferred_element_type=jnp.float32
        )

        # Decoder MLP (LeakyReLU hidden layers), run once over all rows.
        h = z
        for layer in range(n_layers):
            w = layer_refs[2 * layer][...]                  # (d_in, n_hidden)
            b = layer_refs[2 * layer + 1][...]              # (1, n_hidden)
            h = jnp.dot(h, w, preferred_element_type=jnp.float32) + b
            h = jnp.where(h > 0, h, LEAKY_SLOPE * h)        # LeakyReLU

        # Fused loc|scale head: one matmul, then split lanes.
        head = jnp.dot(h, wh_ref[...], preferred_element_type=jnp.float32) + bh_ref[...]
        loc = head[:, :n_phenos]
        scale = jax.nn.softplus(head[:, n_phenos:])
        x = loc + scale * eps_ref[...]                      # Normal(loc, scale) sample

        # Single lane-dense store: [loc | scale | x | zero-pad].
        pieces = [loc, scale, x]
        if out_pad > 0:
            pieces.append(jnp.zeros((loc.shape[0], out_pad), jnp.float32))
        out_ref[...] = jnp.concatenate(pieces, axis=-1)

    return kernel


def cpa_vae_decode_and_sample(
    D: jax.Array,             # (n, n_treatments) f32
    z_basal: jax.Array,       # (n_particles, n, n_latent) f32
    E: jax.Array,             # (n_particles, n_treatments, n_latent) f32
    eps: jax.Array,           # (n_particles, n, n_phenos) f32, N(0,1) noise
    params: Dict[str, jax.Array],
    n_layers: int,
) -> Tuple[jax.Array, jax.Array, jax.Array]:
    n, n_treatments = D.shape
    n_particles, _, n_latent = z_basal.shape
    n_phenos = eps.shape[-1]
    m = n_particles * n

    # Fold the particle dimension into the matmul M dimension.
    #   kron(I_P, D): (P*n, P*T) block-diagonal dosage matrix, so that
    #   kron(I_P, D) @ reshape(E, (P*T, L)) == stack_p(D @ E_p).
    d_blk = jnp.kron(jnp.eye(n_particles, dtype=D.dtype), D)
    zb_flat = z_basal.reshape(m, n_latent)
    e_flat = E.reshape(n_particles * n_treatments, n_latent)
    eps_flat = eps.reshape(m, n_phenos)

    # Hidden-layer params + fused head params (loc|scale concatenated).
    flat_params = []
    for i in range(n_layers):
        flat_params.append(params[f"w{i}"])
        flat_params.append(params[f"b{i}"])
    w_head = jnp.concatenate([params["w_loc"], params["w_scale"]], axis=1)  # (H, 2*P)
    b_head = jnp.concatenate([params["b_loc"], params["b_scale"]], axis=1)  # (1, 2*P)

    out_cols = 3 * n_phenos
    out_cols_padded = _round_up(out_cols, 128)   # lane-dense output width
    out_pad = out_cols_padded - out_cols

    kernel = _make_cpa_vae_kernel(n_layers, n_phenos, out_pad)

    # Single invocation (no grid): every operand is a whole-array VMEM block;
    # all decoder matmuls run once with M = n_particles * n rows.
    fused = pl.pallas_call(
        kernel,
        out_shape=jax.ShapeDtypeStruct((m, out_cols_padded), jnp.float32),
    )(d_blk, zb_flat, e_flat, eps_flat, *flat_params, w_head, b_head)

    loc = fused[:, 0:n_phenos].reshape(n_particles, n, n_phenos)
    scale = fused[:, n_phenos:2 * n_phenos].reshape(n_particles, n, n_phenos)
    x = fused[:, 2 * n_phenos:3 * n_phenos].reshape(n_particles, n, n_phenos)
    return loc, scale, x


def init_params(key, n_latent, n_phenos, n_layers, n_hidden):
    """Deterministic decoder-MLP parameter init (Normal-likelihood MLP)."""
    params = {}
    d_in = n_latent
    keys = jax.random.split(key, n_layers + 2)
    for i in range(n_layers):
        kw, _ = jax.random.split(keys[i])
        params[f"w{i}"] = (jax.random.normal(kw, (d_in, n_hidden), jnp.float32)
                           * (1.0 / jnp.sqrt(d_in)))
        params[f"b{i}"] = jnp.zeros((1, n_hidden), jnp.float32)
        d_in = n_hidden
    kw, _ = jax.random.split(keys[n_layers])
    params["w_loc"] = (jax.random.normal(kw, (d_in, n_phenos), jnp.float32)
                       * (1.0 / jnp.sqrt(d_in)))
    params["b_loc"] = jnp.zeros((1, n_phenos), jnp.float32)
    kw, _ = jax.random.split(keys[n_layers + 1])
    params["w_scale"] = (jax.random.normal(kw, (d_in, n_phenos), jnp.float32)
                         * (1.0 / jnp.sqrt(d_in)))
    params["b_scale"] = jnp.zeros((1, n_phenos), jnp.float32)
    return params


def cpa_vae_forward(
    D: jax.Array,
    params: Dict[str, jax.Array],
    key: jax.Array,
    *,
    n_latent: int,
    n_treatments: int,
    n_phenos: int,
    embedding_prior_scale: float,
    n_layers: int,
    n_particles: int,
    condition_values: Optional[Dict[str, jax.Array]] = None,
):
    """Mirrors CPAVAEModel.forward (non-'library_nb' likelihood)."""
    if condition_values is None:
        condition_values = {}
    n = D.shape[0]

    # Generative (prior) distributions — represented as (loc, scale) arrays.
    p_E_loc = jnp.zeros((n_treatments, n_latent), jnp.float32)
    p_E_scale = embedding_prior_scale * jnp.ones((n_treatments, n_latent), jnp.float32)
    generative_dists = {
        "p_z_basal": (jnp.zeros((n, n_latent), jnp.float32),
                      jnp.ones((n, n_latent), jnp.float32)),
        "p_E": (p_E_loc, p_E_scale),
    }

    kz, kE, kx = jax.random.split(key, 3)
    samples = {}

    # z_basal ~ N(0, 1), shape (n_particles, n, n_latent) unless conditioned.
    if "z_basal" in condition_values and condition_values["z_basal"] is not None:
        v = condition_values["z_basal"]
        samples["z_basal"] = (jnp.broadcast_to(v, (n_particles,) + v.shape)
                              if v.ndim == 2 else v)
    else:
        samples["z_basal"] = jax.random.normal(kz, (n_particles, n, n_latent), jnp.float32)

    # E ~ N(p_E_loc, p_E_scale), shape (n_particles, n_treatments, n_latent).
    if "E" in condition_values and condition_values["E"] is not None:
        v = condition_values["E"]
        samples["E"] = (jnp.broadcast_to(v, (n_particles,) + v.shape)
                        if v.ndim == 2 else v)
    else:
        samples["E"] = (p_E_loc[None]
                        + p_E_scale[None]
                        * jax.random.normal(kE, (n_particles, n_treatments, n_latent),
                                            jnp.float32))

    # Reparameterization noise for the observation sample x ~ p_x.
    eps = jax.random.normal(kx, (n_particles, n, n_phenos), jnp.float32)

    loc, scale, x = cpa_vae_decode_and_sample(
        D.astype(jnp.float32), samples["z_basal"], samples["E"], eps, params, n_layers
    )

    generative_dists["p_x"] = (loc, scale)
    samples["x"] = x
    return generative_dists, samples


if __name__ == "__main__":
    # Small shapes consistent with the module.
    n = 8
    n_treatments = 4
    n_latent = 16
    n_phenos = 32
    n_hidden = 32
    decoder_n_layers = 2
    n_particles = 2
    embedding_prior_scale = 1.0

    key = jax.random.PRNGKey(0)
    k_param, k_data, k_fwd = jax.random.split(key, 3)

    params = init_params(k_param, n_latent, n_phenos, decoder_n_layers, n_hidden)

    # Dosage matrix D (n, n_treatments): nonnegative dosages.
    D = jax.random.uniform(k_data, (n, n_treatments), jnp.float32)

    fwd = jax.jit(functools.partial(
        cpa_vae_forward,
        n_latent=n_latent,
        n_treatments=n_treatments,
        n_phenos=n_phenos,
        embedding_prior_scale=embedding_prior_scale,
        n_layers=decoder_n_layers,
        n_particles=n_particles,
    ))

    dists, samples = fwd(D, params, k_fwd)

    jax.block_until_ready(samples["x"])
    assert samples["x"].shape == (n_particles, n, n_phenos)
    assert dists["p_x"][0].shape == (n_particles, n, n_phenos)
    assert dists["p_x"][1].shape == (n_particles, n, n_phenos)
    assert bool(jnp.all(dists["p_x"][1] > 0))          # softplus scale is positive
    assert samples["z_basal"].shape == (n_particles, n, n_latent)
    assert samples["E"].shape == (n_particles, n_treatments, n_latent)
    assert bool(jnp.all(jnp.isfinite(samples["x"])))
    print("KERNEL_OK")
</pallas_src>

<mosaic_0001>
module attributes {stable_mosaic.version = 11 : i64} {
  func.func @kernel(%arg0: memref<16x8xf32, #tpu.memory_space<vmem>>, %arg1: memref<16x16xf32, #tpu.memory_space<vmem>>, %arg2: memref<8x16xf32, #tpu.memory_space<vmem>>, %arg3: memref<16x32xf32, #tpu.memory_space<vmem>>, %arg4: memref<16x32xf32, #tpu.memory_space<vmem>>, %arg5: memref<1x32xf32, #tpu.memory_space<vmem>>, %arg6: memref<32x32xf32, #tpu.memory_space<vmem>>, %arg7: memref<1x32xf32, #tpu.memory_space<vmem>>, %arg8: memref<32x64xf32, #tpu.memory_space<vmem>>, %arg9: memref<1x64xf32, #tpu.memory_space<vmem>>, %arg10: memref<16x128xf32, #tpu.memory_space<vmem>>) attributes {dimension_semantics = [], scalar_prefetch = 0 : i64, scratch_operands = 0 : i64, tpu.core_type = #tpu.core_type<tc>} {
    %c0 = arith.constant 0 : index
    %c0_0 = arith.constant 0 : index
    %0 = vector.load %arg1[%c0, %c0_0] : memref<16x16xf32, #tpu.memory_space<vmem>>, vector<16x16xf32>
    %c0_1 = arith.constant 0 : index
    %c0_2 = arith.constant 0 : index
    %1 = vector.load %arg0[%c0_1, %c0_2] : memref<16x8xf32, #tpu.memory_space<vmem>>, vector<16x8xf32>
    %c0_3 = arith.constant 0 : index
    %c0_4 = arith.constant 0 : index
    %2 = vector.load %arg2[%c0_3, %c0_4] : memref<8x16xf32, #tpu.memory_space<vmem>>, vector<8x16xf32>
    %cst = arith.constant dense<0.000000e+00> : vector<16x16xf32>
    %3 = tpu.matmul %1, %2, %cst {dimension_numbers = #tpu.dot_dimension_numbers<[1], [0], [0], [1], [0, 0, 1, 1], [], []>} : vector<16x8xf32>, vector<8x16xf32>, vector<16x16xf32> -> vector<16x16xf32>
    %4 = arith.addf %0, %3 : vector<16x16xf32>
    %c0_5 = arith.constant 0 : index
    %c0_6 = arith.constant 0 : index
    %5 = vector.load %arg4[%c0_5, %c0_6] : memref<16x32xf32, #tpu.memory_space<vmem>>, vector<16x32xf32>
    %c0_7 = arith.constant 0 : index
    %c0_8 = arith.constant 0 : index
    %6 = vector.load %arg5[%c0_7, %c0_8] : memref<1x32xf32, #tpu.memory_space<vmem>>, vector<1x32xf32>
    %cst_9 = arith.constant dense<0.000000e+00> : vector<16x32xf32>
    %7 = tpu.matmul %4, %5, %cst_9 {dimension_numbers = #tpu.dot_dimension_numbers<[1], [0], [0], [1], [0, 0, 1, 1], [], []>} : vector<16x16xf32>, vector<16x32xf32>, vector<16x32xf32> -> vector<16x32xf32>
    %8 = vector.broadcast %6 : vector<1x32xf32> to vector<16x32xf32>
    %9 = arith.addf %7, %8 : vector<16x32xf32>
    %cst_10 = arith.constant 0.000000e+00 : f32
    %10 = vector.broadcast %cst_10 : f32 to vector<16x32xf32>
    %11 = arith.cmpf ogt, %9, %10 : vector<16x32xf32>
    %cst_11 = arith.constant 0.00999999977 : f32
    %12 = vector.broadcast %cst_11 : f32 to vector<16x32xf32>
    %13 = arith.mulf %12, %9 : vector<16x32xf32>
    %14 = arith.select %11, %9, %13 : vector<16x32xi1>, vector<16x32xf32>
    %c0_12 = arith.constant 0 : index
    %c0_13 = arith.constant 0 : index
    %15 = vector.load %arg6[%c0_12, %c0_13] : memref<32x32xf32, #tpu.memory_space<vmem>>, vector<32x32xf32>
    %c0_14 = arith.constant 0 : index
    %c0_15 = arith.constant 0 : index
    %16 = vector.load %arg7[%c0_14, %c0_15] : memref<1x32xf32, #tpu.memory_space<vmem>>, vector<1x32xf32>
    %cst_16 = arith.constant dense<0.000000e+00> : vector<16x32xf32>
    %17 = tpu.matmul %14, %15, %cst_16 {dimension_numbers = #tpu.dot_dimension_numbers<[1], [0], [0], [1], [0, 0, 1, 1], [], []>} : vector<16x32xf32>, vector<32x32xf32>, vector<16x32xf32> -> vector<16x32xf32>
    %18 = vector.broadcast %16 : vector<1x32xf32> to vector<16x32xf32>
    %19 = arith.addf %17, %18 : vector<16x32xf32>
    %cst_17 = arith.constant 0.000000e+00 : f32
    %20 = vector.broadcast %cst_17 : f32 to vector<16x32xf32>
    %21 = arith.cmpf ogt, %19, %20 : vector<16x32xf32>
    %cst_18 = arith.constant 0.00999999977 : f32
    %22 = vector.broadcast %cst_18 : f32 to vector<16x32xf32>
    %23 = arith.mulf %22, %19 : vector<16x32xf32>
    %24 = arith.select %21, %19, %23 : vector<16x32xi1>, vector<16x32xf32>
    %c0_19 = arith.constant 0 : index
    %c0_20 = arith.constant 0 : index
    %25 = vector.load %arg8[%c0_19, %c0_20] : memref<32x64xf32, #tpu.memory_space<vmem>>, vector<32x64xf32>
    %cst_21 = arith.constant dense<0.000000e+00> : vector<16x64xf32>
    %26 = tpu.matmul %24, %25, %cst_21 {dimension_numbers = #tpu.dot_dimension_numbers<[1], [0], [0], [1], [0, 0, 1, 1], [], []>} : vector<16x32xf32>, vector<32x64xf32>, vector<16x64xf32> -> vector<16x64xf32>
    %c0_22 = arith.constant 0 : index
    %c0_23 = arith.constant 0 : index
    %27 = vector.load %arg9[%c0_22, %c0_23] : memref<1x64xf32, #tpu.memory_space<vmem>>, vector<1x64xf32>
    %28 = vector.broadcast %27 : vector<1x64xf32> to vector<16x64xf32>
    %29 = arith.addf %26, %28 : vector<16x64xf32>
    %30 = vector.extract_strided_slice %29 {offsets = [0, 0], sizes = [16, 32], strides = [1, 1]} : vector<16x64xf32> to vector<16x32xf32>
    %31 = vector.extract_strided_slice %29 {offsets = [0, 32], sizes = [16, 32], strides = [1, 1]} : vector<16x64xf32> to vector<16x32xf32>
    %cst_24 = arith.constant 0.000000e+00 : f32
    %32 = vector.broadcast %cst_24 : f32 to vector<16x32xf32>
    %33 = arith.maximumf %31, %32 : vector<16x32xf32>
    %34 = vector.broadcast %cst_24 : f32 to vector<16x32xf32>
    %35 = arith.subf %31, %34 : vector<16x32xf32>
    %36 = arith.cmpf one, %35, %35 : vector<16x32xf32>
    %37 = vector.broadcast %cst_24 : f32 to vector<16x32xf32>
    %38 = arith.addf %31, %37 : vector<16x32xf32>
    %39 = math.absf %35 : vector<16x32xf32>
    %cst_25 = arith.constant 0.000000e+00 : f32
    %40 = vector.broadcast %cst_25 : f32 to vector<16x32xf32>
    %41 = arith.subf %40, %39 : vector<16x32xf32>
    %42 = math.exp %41 : vector<16x32xf32>
    %43 = math.log1p %42 : vector<16x32xf32>
    %44 = arith.addf %33, %43 : vector<16x32xf32>
    %45 = arith.select %36, %38, %44 : vector<16x32xi1>, vector<16x32xf32>
    %c0_26 = arith.constant 0 : index
    %c0_27 = arith.constant 0 : index
    %46 = vector.load %arg3[%c0_26, %c0_27] : memref<16x32xf32, #tpu.memory_space<vmem>>, vector<16x32xf32>
    %47 = arith.mulf %45, %46 : vector<16x32xf32>
    %48 = arith.addf %30, %47 : vector<16x32xf32>
    %cst_28 = arith.constant 0.000000e+00 : f32
    %49 = vector.broadcast %cst_28 : f32 to vector<16x32xf32>
    %50 = tpu.concatenate %30, %45, %48, %49 in 1 : vector<16x32xf32>, vector<16x32xf32>, vector<16x32xf32>, vector<16x32xf32> -> vector<16x128xf32>
    %c0_29 = arith.constant 0 : index
    %c0_30 = arith.constant 0 : index
    %51 = vector.load %arg10[%c0_29, %c0_30] : memref<16x128xf32, #tpu.memory_space<vmem>>, vector<16x128xf32>
    tpu.vector_store %arg10[%c0_29, %c0_30], %50 {strides = array<i32>} : memref<16x128xf32, #tpu.memory_space<vmem>>, vector<16x128xf32>,
    return
  }
}

</mosaic_0001>

<bundles_post_ra>
// kernel: cpa_vae_forward.3
= control target key start
LH: loop header
LB: loop body
LE: loop exit
PB: predicated region body
PF: predicated region fallthrough
CT: control target
= control target key end

     0   :  { %vm40_vm0 = vcmask 64512   ;;  %vm133_vm1 = vcmask 130048   ;;  %vm232_vm4 = vcmask 261120   ;;  %s567_s21 = smov 32   ;;  %vm480_vm11 = vcmask 523264   ;;  %s706_s2 = inlined_call_operand.vmem [shape: f32[8,16], index: 2, kind: input, shape index: {}]   ;;  %s707_s0 = inlined_call_operand.vmem [shape: f32[16,8], index: 0, kind: input, shape index: {}]   ;;  %s708_s4 = inlined_call_operand.vmem [shape: f32[16,32], index: 4, kind: input, shape index: {}]   ;;  %s709_s1 = inlined_call_operand.vmem [shape: f32[16,16], index: 1, kind: input, shape index: {}]   ;;  %s710_s6 = inlined_call_operand.vmem [shape: f32[32,32], index: 6, kind: input, shape index: {}]   ;;  %s711_s5 = inlined_call_operand.vmem [shape: f32[1,32], index: 5, kind: input, shape index: {}]   ;;  %s712_s8 = inlined_call_operand.vmem [shape: f32[32,64], index: 8, kind: input, shape index: {}]   ;;  %s713_s3 = inlined_call_operand.vmem [shape: f32[16,32], index: 3, kind: input, shape index: {}]   ;;  %s714_s7 = inlined_call_operand.vmem [shape: f32[1,32], index: 7, kind: input, shape index: {}]   ;;  %s715_s9 = inlined_call_operand.vmem [shape: f32[1,64], index: 9, kind: input, shape index: {}]   ;;  %s716_s10 = inlined_call_operand.vmem [shape: f32[16,128], index: 10, kind: output, shape index: {}]  }
   0x1   :  { %v39_v0 = vld [vmem:[%s706_s2] sm:$0xff]  ;;  %v38_v2 = vld [vmem:[%s707_s0 + $0x8] sm:$0xff]  ;;  %v224_v11 = vld [vmem:[%s710_s6 + $0x18] sm:$0xff]  ;;  %vm483_vm12 = vcmask 785408  }
   0x2   :  { %v37_v1 = vld [vmem:[%s707_s0] sm:$0xff]  ;;  %522 = vmatprep.subr.mxu0 %v39_v0  ;;  %v125_v3 = vld [vmem:[%s708_s4 + $0x8] sm:$0xff]  ;;  %v223_v12 = vld [vmem:[%s710_s6 + $0x10] sm:$0xff] }
   0x3   :  { %524 = vmatprep.mubr.msk.f32.mxu0 %vm40_vm0, %v37_v1  ;;  %523 = vmatpush3.msra.mxu0 %v39_v0  ;;  %v124_v4 = vld [vmem:[%s708_s4] sm:$0xff]  ;;  %v36_v7 = vld [vmem:[%s709_s1 + $0x8] sm:$0xff]  ;;  %v323_v24 = vld [vmem:[%s712_s8 + $0x18] sm:$0xff] }
   0x4   :  { %525 = vmatmul.mubr.msk.f32.vlgmr.msra.gmra.mxu0 %vm40_vm0, %v38_v2  ;;  %527 = vmatprep.subr.mxu1 %v125_v3  ;;  %v35_v6 = vld [vmem:[%s709_s1] sm:$0xff]  ;;  %v222_v13 = vld [vmem:[%s710_s6 + $0x8] sm:$0xff]  ;;  %v322_v25 = vld [vmem:[%s712_s8 + $0x10] sm:$0xff] }
   0x5   :  { %528 = vmatpush3.msra.mxu1 %v125_v3  ;;  %534 = vmatprep.subr.mxu0 %v224_v11  ;;  %v221_v14 = vld [vmem:[%s710_s6] sm:$0xff]  ;;  %v321_v26 = vld [vmem:[%s712_s8 + $0x8] sm:$0xff] }
   0x6   :  { %529 = vmatprep.subr.mxu1 %v124_v4  ;;  %535 = vmatpush3.msra.mxu0 %v224_v11  ;;  %v494_v15 = vld [vmem:[%s711_s5] ss:$0 sm:$0xff]  ;;  %v449_v29 = vld [vmem:[%s713_s3 + $0x8] sm:$0xff] }
   0x7   :  { %530 = vmatpush3.msra.mxu1 %v124_v4  ;;  %536 = vmatprep.subr.mxu0 %v223_v12  ;;  %v320_v27 = vld [vmem:[%s712_s8] sm:$0xff] }
   0x8   :  { %537 = vmatpush3.msra.mxu0 %v223_v12  ;;  %545 = vmatprep.subr.mxu1 %v323_v24  ;;  %v448_v28 = vld [vmem:[%s713_s3] sm:$0xff] }
   0x9   :  { %538 = vmatprep.subr.mxu0 %v222_v13  ;;  %452 = vrot.lane.b32.xlu0 %v448_v28, %s567_s21  ;;  %v497_v30 = vld [vmem:[%s714_s7] ss:$0 sm:$0xff]  ;;  %s568_s7 = smov 96  }
   0xa   :  { %539 = vmatpush3.msra.mxu0 %v222_v13  ;;  %v500_v39 = vld [vmem:[%s715_s9] ss:$0 sm:$0xff]  ;;  %s569_s9 = smov 64  }
   0xb   :  { %540 = vmatprep.subr.mxu0 %v221_v14 }
   0xc   :  { %541 = vmatpush3.msra.mxu0 %v221_v14 }
   0xd   :  { %454 = vrot.lane.b32.xlu0 %v449_v29, %s567_s21 }
  0x7b   :  { %v453_v3 = vpop.permute.xlu0 %452 }
  0x7f   :  { %v455_v11 = vpop.permute.xlu0 %454 }
  0xc4   :  { %v526_v5 = vpop.f32.mrf.mxu0 }
  0xc5   :  { %v123_v10 = vadd.f32 %v526_v5, %v36_v7 }
  0xc6   :  { %v113_v8 = vpop.f32.mrf.mxu0 }
  0xc7   :  { %v122_v9 = vadd.f32 %v113_v8, %v35_v6 }
  0xc9   :  { %531 = vmatprep.mubr.msk.f32.mxu1 %vm133_vm1, %v122_v9 }
  0xca   :  { %532 = vmatmul.mubr.msk.f32.vlgmr.msra.gmra.mxu1 %vm133_vm1, %v123_v10 }
  0xcb   :  { %546 = vmatpush3.msra.mxu1 %v323_v24 }
  0xcc   :  { %547 = vmatprep.subr.mxu1 %v322_v25 }
  0xcd   :  { %548 = vmatpush3.msra.mxu1 %v322_v25 }
  0xce   :  { %549 = vmatprep.subr.mxu1 %v321_v26 }
  0xcf   :  { %550 = vmatpush3.msra.mxu1 %v321_v26 }
  0xd0   :  { %551 = vmatprep.subr.mxu1 %v320_v27 }
  0xd1   :  { %552 = vmatpush3.msra.mxu1 %v320_v27 }
 0x18a   :  { %v533_v16 = vpop.f32.mrf.mxu1 }
 0x18b   :  { %v212_v17 = vadd.f32 %v533_v16, %v494_v15 }
 0x18c   :  { %v206_v18 = vpop.f32.mrf.mxu1 }
 0x18d   :  { %v207_v19 = vadd.f32 %v494_v15, %v206_v18  ;;  %v218_v20 = vmul.f32 0.01, %v212_v17  ;;  %vm216_vm2 = vcmp.gt.f32.partialorder %v212_v17, 0.0 }
 0x18f   :  { %vm215_vm3 = vcmp.gt.f32.partialorder %v207_v19, 0.0  ;;  %v217_v21 = vmul.f32 0.01, %v207_v19  ;;  %v220_v23 = vsel %vm216_vm2, %v212_v17, %v218_v20 }
 0x191   :  { %v219_v22 = vsel %vm215_vm3, %v207_v19, %v217_v21 }
 0x192   :  { %542 = vmatprep.mubr.msk.f32.mxu0 %vm232_vm4, %v219_v22 }
 0x193   :  { %543 = vmatmul.mubr.msk.f32.vlgmr.msra.gmra.mxu0 %vm232_vm4, %v220_v23 }
 0x253   :  { %v544_v31 = vpop.f32.mrf.mxu0 }
 0x254   :  { %v311_v32 = vadd.f32 %v544_v31, %v497_v30 }
 0x255   :  { %v305_v33 = vpop.f32.mrf.mxu0 }
 0x256   :  { %v306_v34 = vadd.f32 %v497_v30, %v305_v33  ;;  %v317_v35 = vmul.f32 0.01, %v311_v32  ;;  %vm315_vm5 = vcmp.gt.f32.partialorder %v311_v32, 0.0 }
 0x258   :  { %vm314_vm6 = vcmp.gt.f32.partialorder %v306_v34, 0.0  ;;  %v316_v36 = vmul.f32 0.01, %v306_v34  ;;  %v319_v38 = vsel %vm315_vm5, %v311_v32, %v317_v35 }
 0x25a   :  { %v318_v37 = vsel %vm314_vm6, %v306_v34, %v316_v36 }
 0x25b   :  { %553 = vmatprep.mubr.msk.f32.mxu1 %vm232_vm4, %v318_v37 }
 0x25c   :  { %554 = vmatmul.mubr.msk.f32.vlgmr.msra.gmra.mxu1 %vm232_vm4, %v319_v38 }
 0x31c   :  { %v555_v40 = vpop.f32.mrf.mxu1 }
 0x31d   :  { %v689_v41 = vadd.f32 %v555_v40, %v500_v39 }
 0x31e   :  { %v403_v42 = vpop.f32.mrf.mxu1 }
 0x31f   :  { %v419_v43 = vand.u32 2147483647, %v689_v41  ;;  %v404_v44 = vadd.f32 %v500_v39, %v403_v42  ;;  %v413_v5 = vmax.f32 %v689_v41, 0.0  ;;  %vm415_vm10 = vcmp.ne.f32.partialorder %v689_v41, %v689_v41 }
 0x321   :  { %v421_v45 = vsub.f32 0.0, %v419_v43  ;;  %v418_v46 = vand.u32 2147483647, %v404_v44  ;;  %v412_v4 = vmax.f32 %v404_v44, 0.0  ;;  %vm414_vm9 = vcmp.ne.f32.partialorder %v404_v44, %v404_v44 }
 0x323   :  { %v424_v47 = vmul.f32 1.442695, %v421_v45  ;;  %v420_v48 = vsub.f32 0.0, %v418_v46 }
 0x325   :  { %559 = vpow2.f32 %v424_v47  ;;  %v422_v49 = vmul.f32 1.442695, %v420_v48 }
 0x327   :  { %561 = vpow2.f32 %v422_v49 }
 0x332   :  { %v560_v50 = vpop.eup %559 }
 0x333   :  { %v435_v51 = vadd.f32 1.0, %v560_v50  ;;  %v438_v54 = vmul.f32 -0.5, %v560_v50  ;;  %v441_v57 = vand.u32 2147483647, %v560_v50 }
 0x334   :  { %v562_v52 = vpop.eup %561 }
 0x335   :  { %v426_v53 = vadd.f32 1.0, %v562_v52  ;;  %563 = vlog2.f32 %v435_v51  ;;  %v429_v55 = vmul.f32 -0.5, %v562_v52  ;;  %v439_v56 = vadd.f32 1.0, %v438_v54 }
 0x336   :  { %v432_v60 = vand.u32 2147483647, %v562_v52  ;;  %vm442_vm7 = vcmp.lt.f32.partialorder %v441_v57, 0.0004427343 }
 0x337   :  { %565 = vlog2.f32 %v426_v53  ;;  %v430_v58 = vadd.f32 1.0, %v429_v55  ;;  %v440_v62 = vmul.f32 %v560_v50, %v439_v56 }
 0x338   :  { %vm433_vm8 = vcmp.lt.f32.partialorder %v432_v60, 0.0004427343 }
 0x339   :  { %v431_v1 = vmul.f32 %v562_v52, %v430_v58 }
 0x342   :  { %v564_v59 = vpop.eup %563 }
 0x343   :  { %v437_v61 = vmul.f32 0.6931472, %v564_v59 }
 0x344   :  { %v566_v63 = vpop.eup %565 }
 0x345   :  { %v428_v0 = vmul.f32 0.6931472, %v566_v63  ;;  %v443_v2 = vsel %vm442_vm7, %v440_v62, %v437_v61 }
 0x346   :  { %v445_v8 = vadd.f32 %v443_v2, %v413_v5 }
 0x347   :  { %v434_v6 = vsel %vm433_vm8, %v431_v1, %v428_v0 }
 0x348   :  { %v444_v7 = vadd.f32 %v434_v6, %v412_v4  ;;  %v447_v12 = vsel %vm415_vm10, %v689_v41, %v445_v8 }
 0x349   :  { %v459_v13 = vmul.f32 %v455_v11, %v447_v12  ;;  %v479_v22 = vsel %vm232_vm4, %v689_v41, %v447_v12 }
 0x34a   :  { %v446_v9 = vsel %vm414_vm9, %v404_v44, %v444_v7 }
 0x34b   :  { %v458_v10 = vmul.f32 %v453_v3, %v446_v9  ;;  %v478_v18 = vsel %vm232_vm4, %v404_v44, %v446_v9 }
 0x34d   :  { %462 = vrot.lane.b32.xlu1 %v458_v10, %s568_s7 }
 0x351   :  { %464 = vrot.lane.b32.xlu1 %v459_v13, %s568_s7 }
 0x3bf   :  { %v463_v14 = vpop.permute.xlu1 %462 }
 0x3c0   :  { %v468_v15 = vadd.f32 %v463_v14, %v404_v44 }
 0x3c2   :  { %472 = vrot.lane.b32.xlu0 %v468_v15, %s569_s9 }
 0x3c3   :  { %v465_v16 = vpop.permute.xlu1 %464 }
 0x3c4   :  { %v469_v17 = vadd.f32 %v465_v16, %v689_v41 }
 0x3c6   :  { %474 = vrot.lane.b32.xlu1 %v469_v17, %s569_s9 }
 0x434   :  { %v473_v19 = vpop.permute.xlu0 %472 }
 0x435   :  { %v481_v20 = vsel %vm480_vm11, %v478_v18, %v473_v19 }
 0x436   :  { %v484_v21 = vsel %vm483_vm12, %v481_v20, 0.0 }
 0x437   :  { %486 = vst [vmem:[%s716_s10] sm:$0xff] %v484_v21 }
 0x438   :  { %v475_v23 = vpop.permute.xlu1 %474 }
 0x439   :  { %v482_v24 = vsel %vm480_vm11, %v479_v22, %v475_v23 }
 0x43a   :  { %v485_v25 = vsel %vm483_vm12, %v482_v24, 0.0 }
 0x43b   :  { %487 = vst [vmem:[%s716_s10 + $0x8] sm:$0xff] %v485_v25 }

</bundles_post_ra>
